<compile_context>
chip_gen: v6e
topology: v6e:2x2x1
jax: 0.10.0
libtpu: 0.0.40
codegen_flags: <defaults>
</compile_context>

<pallas_src>
import jax
import jax.numpy as jnp
from jax.experimental import pallas as pl
from jax.experimental.pallas import tpu as pltpu


def _consensus_kernel(ew_ref, scale_ref, logits_ref, multi_ref, loss_ref):
    """Single-invocation kernel.

    ew_ref     : SMEM (N,)  f32  -- exp(q - max(q)); unnormalized mixture weights
    scale_ref  : SMEM (1,)  f32  -- alpha / batch
    logits_ref : VMEM (N, B, C)  -- each agent's own logits
    multi_ref  : VMEM (N, N, B, C)
    loss_ref   : VMEM (1, 1) f32 -- alpha * kl_loss
    """
    n_agents = logits_ref.shape[0]

    acc = None  # (B, C) accumulator of per-element KL contributions
    for i in range(n_agents):
        # student: log_softmax of agent i's own logits                   (B, C)
        x = logits_ref[i]
        xm = x - jnp.max(x, axis=-1, keepdims=True)
        pred = xm - jnp.log(jnp.sum(jnp.exp(xm), axis=-1, keepdims=True))

        # teacher: probability-space mixture over the *other* agents.
        # Unnormalized weights ew[j] = exp(q[j] - max q); the row-softmax
        # normalization cancels in the exact class renormalization below.
        mix = None
        for j in range(n_agents):
            if j == i:  # masked weight underflows to exactly 0 -> skip
                continue
            y = multi_ref[i, j]                                       # (B, C)
            e = jnp.exp(y - jnp.max(y, axis=-1, keepdims=True))
            inv = 1.0 / jnp.sum(e, axis=-1, keepdims=True)            # (B, 1)
            term = e * (ew_ref[j] * inv)   # fused weight * softmax-normalize
            mix = term if mix is None else mix + term

        # exact renormalization over classes -> matches the reference's
        # log_softmax(logsumexp(...)) up to f32 rounding
        mix = mix * (1.0 / jnp.sum(mix, axis=-1, keepdims=True))

        # KLDivLoss(log_target=True): exp(target) * (target - input)
        contrib = mix * (jnp.log(mix) - pred)                         # (B, C)
        acc = contrib if acc is None else acc + contrib

    # stay in vector form all the way to the (1, 1) output
    total = jnp.sum(acc, axis=-1, keepdims=True)                      # (B, 1)
    total = jnp.sum(total, axis=0, keepdims=True)                     # (1, 1)
    loss_ref[...] = total * scale_ref[0]


def consensus_forth_loss_pallas(models_logits, models_logits_multiple, q, alpha):
    """models_logits: (N, B, C); models_logits_multiple: (N, N, B, C); q: (N,)."""
    n_agents, batch, n_classes = models_logits.shape
    del n_classes  # lane-dense last dim; see scaling TODO above

    # Only the unnormalized exp(q - max q) is needed; normalization (and the
    # diagonal -1e10 mask) are handled inside the kernel.
    ew = jnp.exp(q.astype(jnp.float32) - jnp.max(q.astype(jnp.float32)))
    scale = (jnp.asarray(alpha, dtype=jnp.float32) / batch).reshape((1,))

    loss = pl.pallas_call(
        _consensus_kernel,
        out_shape=jax.ShapeDtypeStruct((1, 1), jnp.float32),
        in_specs=[
            pl.BlockSpec(memory_space=pltpu.MemorySpace.SMEM),   # ew    (N,)
            pl.BlockSpec(memory_space=pltpu.MemorySpace.SMEM),   # scale (1,)
            pl.BlockSpec(memory_space=pltpu.MemorySpace.VMEM),   # logits
            pl.BlockSpec(memory_space=pltpu.MemorySpace.VMEM),   # multi
        ],
        out_specs=pl.BlockSpec(memory_space=pltpu.MemorySpace.VMEM),
    )(ew, scale,
      models_logits.astype(jnp.float32),
      models_logits_multiple.astype(jnp.float32))

    return loss[0, 0]


def consensus_forth_loss_reference(models_logits, models_multi, q, alpha):
    """Pure-JAX log-space reference matching the PyTorch forward exactly (T=1)."""
    n, b, _ = models_logits.shape
    mask = 1.0 - jnp.eye(n, dtype=jnp.float32)
    ql = jax.nn.log_softmax(q[None, :] * mask - (1.0 - mask) * 1e10, axis=-1)
    pred = jax.nn.log_softmax(models_logits, axis=-1)
    multi = jax.nn.log_softmax(models_multi, axis=-1) + ql[:, :, None, None]
    ens = jax.nn.logsumexp(multi, axis=1)
    ens_n = jax.nn.log_softmax(ens, axis=-1)
    kl = jnp.sum(jnp.exp(ens_n) * (ens_n - pred)) / b
    return alpha * kl


def consensus_forth_loss(models_logits, models_logits_multiple, q, alpha,
                         use_pallas=None):
    """Size-dispatched entry point.

    For tiny problems the pallas_call fixed overhead (custom-call boundary,
    DMA setup) exceeds the ~15 transcendental vreg-tiles of actual work and
    blocks XLA fusion, so we fall back to the fused pure-jnp path below a
    ~1 MiB threshold unless explicitly overridden.
    """
    n, b, c = models_logits.shape
    if use_pallas is None:
        use_pallas = (n * n * b * c * 4) >= (1 << 20)
    if use_pallas:
        return consensus_forth_loss_pallas(models_logits, models_logits_multiple,
                                           q, alpha)
    return consensus_forth_loss_reference(models_logits, models_logits_multiple,
                                          q, alpha)


if __name__ == "__main__":
    N, B, C = 3, 8, 128          # num_agent=3, batch=8, num_classes=128
    alpha = 0.5                  # config.alpha_values

    key = jax.random.PRNGKey(0)
    k1, k2 = jax.random.split(key)
    models_logits = jax.random.normal(k1, (N, B, C), dtype=jnp.float32)
    models_logits_multiple = jax.random.normal(k2, (N, N, B, C), dtype=jnp.float32)
    q = jnp.zeros((N,), dtype=jnp.float32)   # nn.Parameter(torch.zeros(N))

    # exercise the Pallas path explicitly (the dispatcher would pick jnp here)
    loss = consensus_forth_loss_pallas(models_logits, models_logits_multiple, q, alpha)
    loss = jax.block_until_ready(loss)

    ref = consensus_forth_loss_reference(models_logits, models_logits_multiple, q, alpha)
    assert jnp.allclose(loss, ref, rtol=1e-4, atol=1e-4), (loss, ref)
    print("KERNEL_OK")
</pallas_src>

<mosaic_0001>
module attributes {stable_mosaic.version = 11 : i64} {
  func.func @_consensus_kernel(%arg0: memref<3xf32, #tpu.memory_space<smem>>, %arg1: memref<1xf32, #tpu.memory_space<smem>>, %arg2: memref<3x8x128xf32, #tpu.memory_space<vmem>>, %arg3: memref<3x3x8x128xf32, #tpu.memory_space<vmem>>, %arg4: memref<1x1xf32, #tpu.memory_space<vmem>>) attributes {dimension_semantics = [], scalar_prefetch = 0 : i64, scratch_operands = 0 : i64, tpu.core_type = #tpu.core_type<tc>} {
    %c0 = arith.constant 0 : index
    %c0_0 = arith.constant 0 : index
    %c0_1 = arith.constant 0 : index
    %0 = vector.load %arg2[%c0, %c0_0, %c0_1] : memref<3x8x128xf32, #tpu.memory_space<vmem>>, vector<1x8x128xf32>
    %1 = vector.shape_cast %0 : vector<1x8x128xf32> to vector<8x128xf32>
    %cst = arith.constant dense<0xFF800000> : vector<8xf32>
    %2 = vector.multi_reduction <maximumf>, %1, %cst [1] : vector<8x128xf32> to vector<8xf32>
    %3 = vector.shape_cast %2 : vector<8xf32> to vector<8x1xf32>
    %4 = vector.broadcast %3 : vector<8x1xf32> to vector<8x128xf32>
    %5 = arith.subf %1, %4 : vector<8x128xf32>
    %6 = math.exp %5 : vector<8x128xf32>
    %cst_2 = arith.constant dense<0.000000e+00> : vector<8xf32>
    %7 = vector.multi_reduction <add>, %6, %cst_2 [1] : vector<8x128xf32> to vector<8xf32>
    %8 = vector.shape_cast %7 : vector<8xf32> to vector<8x1xf32>
    %9 = math.log %8 : vector<8x1xf32>
    %10 = vector.broadcast %9 : vector<8x1xf32> to vector<8x128xf32>
    %11 = arith.subf %5, %10 : vector<8x128xf32>
    %c0_3 = arith.constant 0 : index
    %c1 = arith.constant 1 : index
    %c0_4 = arith.constant 0 : index
    %c0_5 = arith.constant 0 : index
    %12 = vector.load %arg3[%c0_3, %c1, %c0_4, %c0_5] : memref<3x3x8x128xf32, #tpu.memory_space<vmem>>, vector<1x1x8x128xf32>
    %13 = vector.shape_cast %12 : vector<1x1x8x128xf32> to vector<8x128xf32>
    %cst_6 = arith.constant dense<0xFF800000> : vector<8xf32>
    %14 = vector.multi_reduction <maximumf>, %13, %cst_6 [1] : vector<8x128xf32> to vector<8xf32>
    %15 = vector.shape_cast %14 : vector<8xf32> to vector<8x1xf32>
    %16 = vector.broadcast %15 : vector<8x1xf32> to vector<8x128xf32>
    %17 = arith.subf %13, %16 : vector<8x128xf32>
    %18 = math.exp %17 : vector<8x128xf32>
    %cst_7 = arith.constant dense<0.000000e+00> : vector<8xf32>
    %19 = vector.multi_reduction <add>, %18, %cst_7 [1] : vector<8x128xf32> to vector<8xf32>
    %20 = vector.shape_cast %19 : vector<8xf32> to vector<8x1xf32>
    %cst_8 = arith.constant 1.000000e+00 : f32
    %21 = vector.broadcast %cst_8 : f32 to vector<8x1xf32>
    %22 = arith.divf %21, %20 : vector<8x1xf32>
    %c1_9 = arith.constant 1 : index
    %23 = memref.load %arg0[%c1_9] : memref<3xf32, #tpu.memory_space<smem>>
    %24 = vector.broadcast %23 : f32 to vector<8x1xf32>
    %25 = arith.mulf %24, %22 : vector<8x1xf32>
    %26 = vector.broadcast %25 : vector<8x1xf32> to vector<8x128xf32>
    %27 = arith.mulf %18, %26 : vector<8x128xf32>
    %c0_10 = arith.constant 0 : index
    %c2 = arith.constant 2 : index
    %c0_11 = arith.constant 0 : index
    %c0_12 = arith.constant 0 : index
    %28 = vector.load %arg3[%c0_10, %c2, %c0_11, %c0_12] : memref<3x3x8x128xf32, #tpu.memory_space<vmem>>, vector<1x1x8x128xf32>
    %29 = vector.shape_cast %28 : vector<1x1x8x128xf32> to vector<8x128xf32>
    %cst_13 = arith.constant dense<0xFF800000> : vector<8xf32>
    %30 = vector.multi_reduction <maximumf>, %29, %cst_13 [1] : vector<8x128xf32> to vector<8xf32>
    %31 = vector.shape_cast %30 : vector<8xf32> to vector<8x1xf32>
    %32 = vector.broadcast %31 : vector<8x1xf32> to vector<8x128xf32>
    %33 = arith.subf %29, %32 : vector<8x128xf32>
    %34 = math.exp %33 : vector<8x128xf32>
    %cst_14 = arith.constant dense<0.000000e+00> : vector<8xf32>
    %35 = vector.multi_reduction <add>, %34, %cst_14 [1] : vector<8x128xf32> to vector<8xf32>
    %36 = vector.shape_cast %35 : vector<8xf32> to vector<8x1xf32>
    %cst_15 = arith.constant 1.000000e+00 : f32
    %37 = vector.broadcast %cst_15 : f32 to vector<8x1xf32>
    %38 = arith.divf %37, %36 : vector<8x1xf32>
    %c2_16 = arith.constant 2 : index
    %39 = memref.load %arg0[%c2_16] : memref<3xf32, #tpu.memory_space<smem>>
    %40 = vector.broadcast %39 : f32 to vector<8x1xf32>
    %41 = arith.mulf %40, %38 : vector<8x1xf32>
    %42 = vector.broadcast %41 : vector<8x1xf32> to vector<8x128xf32>
    %43 = arith.mulf %34, %42 : vector<8x128xf32>
    %44 = arith.addf %27, %43 : vector<8x128xf32>
    %cst_17 = arith.constant dense<0.000000e+00> : vector<8xf32>
    %45 = vector.multi_reduction <add>, %44, %cst_17 [1] : vector<8x128xf32> to vector<8xf32>
    %46 = vector.shape_cast %45 : vector<8xf32> to vector<8x1xf32>
    %cst_18 = arith.constant 1.000000e+00 : f32
    %47 = vector.broadcast %cst_18 : f32 to vector<8x1xf32>
    %48 = arith.divf %47, %46 : vector<8x1xf32>
    %49 = vector.broadcast %48 : vector<8x1xf32> to vector<8x128xf32>
    %50 = arith.mulf %44, %49 : vector<8x128xf32>
    %51 = math.log %50 : vector<8x128xf32>
    %52 = arith.subf %51, %11 : vector<8x128xf32>
    %53 = arith.mulf %50, %52 : vector<8x128xf32>
    %c1_19 = arith.constant 1 : index
    %c0_20 = arith.constant 0 : index
    %c0_21 = arith.constant 0 : index
    %54 = vector.load %arg2[%c1_19, %c0_20, %c0_21] : memref<3x8x128xf32, #tpu.memory_space<vmem>>, vector<1x8x128xf32>
    %55 = vector.shape_cast %54 : vector<1x8x128xf32> to vector<8x128xf32>
    %cst_22 = arith.constant dense<0xFF800000> : vector<8xf32>
    %56 = vector.multi_reduction <maximumf>, %55, %cst_22 [1] : vector<8x128xf32> to vector<8xf32>
    %57 = vector.shape_cast %56 : vector<8xf32> to vector<8x1xf32>
    %58 = vector.broadcast %57 : vector<8x1xf32> to vector<8x128xf32>
    %59 = arith.subf %55, %58 : vector<8x128xf32>
    %60 = math.exp %59 : vector<8x128xf32>
    %cst_23 = arith.constant dense<0.000000e+00> : vector<8xf32>
    %61 = vector.multi_reduction <add>, %60, %cst_23 [1] : vector<8x128xf32> to vector<8xf32>
    %62 = vector.shape_cast %61 : vector<8xf32> to vector<8x1xf32>
    %63 = math.log %62 : vector<8x1xf32>
    %64 = vector.broadcast %63 : vector<8x1xf32> to vector<8x128xf32>
    %65 = arith.subf %59, %64 : vector<8x128xf32>
    %c1_24 = arith.constant 1 : index
    %c0_25 = arith.constant 0 : index
    %c0_26 = arith.constant 0 : index
    %c0_27 = arith.constant 0 : index
    %66 = vector.load %arg3[%c1_24, %c0_25, %c0_26, %c0_27] : memref<3x3x8x128xf32, #tpu.memory_space<vmem>>, vector<1x1x8x128xf32>
    %67 = vector.shape_cast %66 : vector<1x1x8x128xf32> to vector<8x128xf32>
    %cst_28 = arith.constant dense<0xFF800000> : vector<8xf32>
    %68 = vector.multi_reduction <maximumf>, %67, %cst_28 [1] : vector<8x128xf32> to vector<8xf32>
    %69 = vector.shape_cast %68 : vector<8xf32> to vector<8x1xf32>
    %70 = vector.broadcast %69 : vector<8x1xf32> to vector<8x128xf32>
    %71 = arith.subf %67, %70 : vector<8x128xf32>
    %72 = math.exp %71 : vector<8x128xf32>
    %cst_29 = arith.constant dense<0.000000e+00> : vector<8xf32>
    %73 = vector.multi_reduction <add>, %72, %cst_29 [1] : vector<8x128xf32> to vector<8xf32>
    %74 = vector.shape_cast %73 : vector<8xf32> to vector<8x1xf32>
    %cst_30 = arith.constant 1.000000e+00 : f32
    %75 = vector.broadcast %cst_30 : f32 to vector<8x1xf32>
    %76 = arith.divf %75, %74 : vector<8x1xf32>
    %c0_31 = arith.constant 0 : index
    %77 = memref.load %arg0[%c0_31] : memref<3xf32, #tpu.memory_space<smem>>
    %78 = vector.broadcast %77 : f32 to vector<8x1xf32>
    %79 = arith.mulf %78, %76 : vector<8x1xf32>
    %80 = vector.broadcast %79 : vector<8x1xf32> to vector<8x128xf32>
    %81 = arith.mulf %72, %80 : vector<8x128xf32>
    %c1_32 = arith.constant 1 : index
    %c2_33 = arith.constant 2 : index
    %c0_34 = arith.constant 0 : index
    %c0_35 = arith.constant 0 : index
    %82 = vector.load %arg3[%c1_32, %c2_33, %c0_34, %c0_35] : memref<3x3x8x128xf32, #tpu.memory_space<vmem>>, vector<1x1x8x128xf32>
    %83 = vector.shape_cast %82 : vector<1x1x8x128xf32> to vector<8x128xf32>
    %cst_36 = arith.constant dense<0xFF800000> : vector<8xf32>
    %84 = vector.multi_reduction <maximumf>, %83, %cst_36 [1] : vector<8x128xf32> to vector<8xf32>
    %85 = vector.shape_cast %84 : vector<8xf32> to vector<8x1xf32>
    %86 = vector.broadcast %85 : vector<8x1xf32> to vector<8x128xf32>
    %87 = arith.subf %83, %86 : vector<8x128xf32>
    %88 = math.exp %87 : vector<8x128xf32>
    %cst_37 = arith.constant dense<0.000000e+00> : vector<8xf32>
    %89 = vector.multi_reduction <add>, %88, %cst_37 [1] : vector<8x128xf32> to vector<8xf32>
    %90 = vector.shape_cast %89 : vector<8xf32> to vector<8x1xf32>
    %cst_38 = arith.constant 1.000000e+00 : f32
    %91 = vector.broadcast %cst_38 : f32 to vector<8x1xf32>
    %92 = arith.divf %91, %90 : vector<8x1xf32>
    %c2_39 = arith.constant 2 : index
    %93 = memref.load %arg0[%c2_39] : memref<3xf32, #tpu.memory_space<smem>>
    %94 = vector.broadcast %93 : f32 to vector<8x1xf32>
    %95 = arith.mulf %94, %92 : vector<8x1xf32>
    %96 = vector.broadcast %95 : vector<8x1xf32> to vector<8x128xf32>
    %97 = arith.mulf %88, %96 : vector<8x128xf32>
    %98 = arith.addf %81, %97 : vector<8x128xf32>
    %cst_40 = arith.constant dense<0.000000e+00> : vector<8xf32>
    %99 = vector.multi_reduction <add>, %98, %cst_40 [1] : vector<8x128xf32> to vector<8xf32>
    %100 = vector.shape_cast %99 : vector<8xf32> to vector<8x1xf32>
    %cst_41 = arith.constant 1.000000e+00 : f32
    %101 = vector.broadcast %cst_41 : f32 to vector<8x1xf32>
    %102 = arith.divf %101, %100 : vector<8x1xf32>
    %103 = vector.broadcast %102 : vector<8x1xf32> to vector<8x128xf32>
    %104 = arith.mulf %98, %103 : vector<8x128xf32>
    %105 = math.log %104 : vector<8x128xf32>
    %106 = arith.subf %105, %65 : vector<8x128xf32>
    %107 = arith.mulf %104, %106 : vector<8x128xf32>
    %108 = arith.addf %53, %107 : vector<8x128xf32>
    %c2_42 = arith.constant 2 : index
    %c0_43 = arith.constant 0 : index
    %c0_44 = arith.constant 0 : index
    %109 = vector.load %arg2[%c2_42, %c0_43, %c0_44] : memref<3x8x128xf32, #tpu.memory_space<vmem>>, vector<1x8x128xf32>
    %110 = vector.shape_cast %109 : vector<1x8x128xf32> to vector<8x128xf32>
    %cst_45 = arith.constant dense<0xFF800000> : vector<8xf32>
    %111 = vector.multi_reduction <maximumf>, %110, %cst_45 [1] : vector<8x128xf32> to vector<8xf32>
    %112 = vector.shape_cast %111 : vector<8xf32> to vector<8x1xf32>
    %113 = vector.broadcast %112 : vector<8x1xf32> to vector<8x128xf32>
    %114 = arith.subf %110, %113 : vector<8x128xf32>
    %115 = math.exp %114 : vector<8x128xf32>
    %cst_46 = arith.constant dense<0.000000e+00> : vector<8xf32>
    %116 = vector.multi_reduction <add>, %115, %cst_46 [1] : vector<8x128xf32> to vector<8xf32>
    %117 = vector.shape_cast %116 : vector<8xf32> to vector<8x1xf32>
    %118 = math.log %117 : vector<8x1xf32>
    %119 = vector.broadcast %118 : vector<8x1xf32> to vector<8x128xf32>
    %120 = arith.subf %114, %119 : vector<8x128xf32>
    %c2_47 = arith.constant 2 : index
    %c0_48 = arith.constant 0 : index
    %c0_49 = arith.constant 0 : index
    %c0_50 = arith.constant 0 : index
    %121 = vector.load %arg3[%c2_47, %c0_48, %c0_49, %c0_50] : memref<3x3x8x128xf32, #tpu.memory_space<vmem>>, vector<1x1x8x128xf32>
    %122 = vector.shape_cast %121 : vector<1x1x8x128xf32> to vector<8x128xf32>
    %cst_51 = arith.constant dense<0xFF800000> : vector<8xf32>
    %123 = vector.multi_reduction <maximumf>, %122, %cst_51 [1] : vector<8x128xf32> to vector<8xf32>
    %124 = vector.shape_cast %123 : vector<8xf32> to vector<8x1xf32>
    %125 = vector.broadcast %124 : vector<8x1xf32> to vector<8x128xf32>
    %126 = arith.subf %122, %125 : vector<8x128xf32>
    %127 = math.exp %126 : vector<8x128xf32>
    %cst_52 = arith.constant dense<0.000000e+00> : vector<8xf32>
    %128 = vector.multi_reduction <add>, %127, %cst_52 [1] : vector<8x128xf32> to vector<8xf32>
    %129 = vector.shape_cast %128 : vector<8xf32> to vector<8x1xf32>
    %cst_53 = arith.constant 1.000000e+00 : f32
    %130 = vector.broadcast %cst_53 : f32 to vector<8x1xf32>
    %131 = arith.divf %130, %129 : vector<8x1xf32>
    %c0_54 = arith.constant 0 : index
    %132 = memref.load %arg0[%c0_54] : memref<3xf32, #tpu.memory_space<smem>>
    %133 = vector.broadcast %132 : f32 to vector<8x1xf32>
    %134 = arith.mulf %133, %131 : vector<8x1xf32>
    %135 = vector.broadcast %134 : vector<8x1xf32> to vector<8x128xf32>
    %136 = arith.mulf %127, %135 : vector<8x128xf32>
    %c2_55 = arith.constant 2 : index
    %c1_56 = arith.constant 1 : index
    %c0_57 = arith.constant 0 : index
    %c0_58 = arith.constant 0 : index
    %137 = vector.load %arg3[%c2_55, %c1_56, %c0_57, %c0_58] : memref<3x3x8x128xf32, #tpu.memory_space<vmem>>, vector<1x1x8x128xf32>
    %138 = vector.shape_cast %137 : vector<1x1x8x128xf32> to vector<8x128xf32>
    %cst_59 = arith.constant dense<0xFF800000> : vector<8xf32>
    %139 = vector.multi_reduction <maximumf>, %138, %cst_59 [1] : vector<8x128xf32> to vector<8xf32>
    %140 = vector.shape_cast %139 : vector<8xf32> to vector<8x1xf32>
    %141 = vector.broadcast %140 : vector<8x1xf32> to vector<8x128xf32>
    %142 = arith.subf %138, %141 : vector<8x128xf32>
    %143 = math.exp %142 : vector<8x128xf32>
    %cst_60 = arith.constant dense<0.000000e+00> : vector<8xf32>
    %144 = vector.multi_reduction <add>, %143, %cst_60 [1] : vector<8x128xf32> to vector<8xf32>
    %145 = vector.shape_cast %144 : vector<8xf32> to vector<8x1xf32>
    %cst_61 = arith.constant 1.000000e+00 : f32
    %146 = vector.broadcast %cst_61 : f32 to vector<8x1xf32>
    %147 = arith.divf %146, %145 : vector<8x1xf32>
    %c1_62 = arith.constant 1 : index
    %148 = memref.load %arg0[%c1_62] : memref<3xf32, #tpu.memory_space<smem>>
    %149 = vector.broadcast %148 : f32 to vector<8x1xf32>
    %150 = arith.mulf %149, %147 : vector<8x1xf32>
    %151 = vector.broadcast %150 : vector<8x1xf32> to vector<8x128xf32>
    %152 = arith.mulf %143, %151 : vector<8x128xf32>
    %153 = arith.addf %136, %152 : vector<8x128xf32>
    %cst_63 = arith.constant dense<0.000000e+00> : vector<8xf32>
    %154 = vector.multi_reduction <add>, %153, %cst_63 [1] : vector<8x128xf32> to vector<8xf32>
    %155 = vector.shape_cast %154 : vector<8xf32> to vector<8x1xf32>
    %cst_64 = arith.constant 1.000000e+00 : f32
    %156 = vector.broadcast %cst_64 : f32 to vector<8x1xf32>
    %157 = arith.divf %156, %155 : vector<8x1xf32>
    %158 = vector.broadcast %157 : vector<8x1xf32> to vector<8x128xf32>
    %159 = arith.mulf %153, %158 : vector<8x128xf32>
    %160 = math.log %159 : vector<8x128xf32>
    %161 = arith.subf %160, %120 : vector<8x128xf32>
    %162 = arith.mulf %159, %161 : vector<8x128xf32>
    %163 = arith.addf %108, %162 : vector<8x128xf32>
    %cst_65 = arith.constant dense<0.000000e+00> : vector<8xf32>
    %164 = vector.multi_reduction <add>, %163, %cst_65 [1] : vector<8x128xf32> to vector<8xf32>
    %165 = vector.shape_cast %164 : vector<8xf32> to vector<8x1xf32>
    %cst_66 = arith.constant dense<0.000000e+00> : vector<1xf32>
    %166 = vector.multi_reduction <add>, %165, %cst_66 [0] : vector<8x1xf32> to vector<1xf32>
    %167 = vector.shape_cast %166 : vector<1xf32> to vector<1x1xf32>
    %c0_67 = arith.constant 0 : index
    %168 = memref.load %arg1[%c0_67] : memref<1xf32, #tpu.memory_space<smem>>
    %169 = vector.broadcast %168 : f32 to vector<1x1xf32>
    %170 = arith.mulf %167, %169 : vector<1x1xf32>
    %c0_68 = arith.constant 0 : index
    %c0_69 = arith.constant 0 : index
    %171 = vector.load %arg4[%c0_68, %c0_69] : memref<1x1xf32, #tpu.memory_space<vmem>>, vector<1x1xf32>
    tpu.vector_store %arg4[%c0_68, %c0_69], %170 {strides = array<i32>} : memref<1x1xf32, #tpu.memory_space<vmem>>, vector<1x1xf32>,
    return
  }
}

</mosaic_0001>

<bundles_post_ra>
// kernel: tpu_custom_call.1
= control target key start
LH: loop header
LB: loop body
LE: loop exit
PB: predicated region body
PF: predicated region fallthrough
CT: control target
= control target key end

     0   :  { %10 = vsyncpa [#allocation6], 0  ;;  %s444_s0 = inlined_call_operand.vmem [shape: f32[3], index: 0, kind: input, shape index: {}]   ;;  %s445_s1 = inlined_call_operand.<no memory space> [shape: f32[1], index: 1, kind: input, shape index: {}]   ;;  %s446_s2 = inlined_call_operand.hbm [shape: f32[3,8,128], index: 2, kind: input, shape index: {}]   ;;  %s447_s3 = inlined_call_operand.hbm [shape: f32[3,3,8,128], index: 3, kind: input, shape index: {}]   ;;  %s448_s4 = inlined_call_operand.hbm [shape: f32[1,1], index: 4, kind: output, shape index: {}]  }
   0x1   :  { %11 = vsyncpa [#allocation4], 0 }
   0x2   :  { %12 = vsyncpa [#allocation9], 0 }
   0x3   :  { %13 = vsyncpa [#allocation5], 0  ;;  %s20_s17 = sshll.u32 %s444_s0, 4  ;;  %s21_s17 = int_to_ptr.vmem [resolvable:$true] %s20_s17 }
   0x4   :  { %s297_s18 = scalar_lea.vmem %s21_s17, 16  ;;  %p302_p1 = scmp.lt.s32.totalorder %s21_s17, %s21_s17 }
   0x5   :  { %p298_p0 = scmp.ne.s32.totalorder %s21_s17, %s297_s18  ;;  %p303_p2 = scmp.lt.s32.totalorder %s297_s18, %s297_s18 }
   0x7   :  { %p304_p3 = por %p303_p2, %p302_p1 }
   0x9   :  { %p305_p4 = pnand %p304_p3, %p298_p0 }
   0xb   :  { %308 = shalt.err (!%p305_p4)
}
   0xc   :  { %s377_s19 = smov [#allocation3]   ;;  %s378_s20 = smov [#allocation7]  }
   0xd   :  { %23 = dma.vmem_to_smem %s21_s17, 16, %s377_s19, [#allocation6]  }
   0xe   :  { %s31_s21 = sshll.u32 %s378_s20, 4  ;;  %s32_s21 = int_to_ptr.vmem [resolvable:$true] %s31_s21 }
   0xf   :  { %s317_s22 = scalar_lea.vmem %s32_s21, 384  ;;  %p322_p6 = scmp.lt.s32.totalorder %s32_s21, %s32_s21 }
  0x10   :  { %p318_p5 = scmp.ne.s32.totalorder %s32_s21, %s317_s22  ;;  %p323_p7 = scmp.lt.s32.totalorder %s317_s22, %s317_s22 }
  0x12   :  { %p324_p8 = por %p323_p7, %p322_p6 }
  0x14   :  { %p325_p9 = pnand %p324_p8, %p318_p5 }
  0x16   :  { %328 = shalt.err (!%p325_p9)
}
  0x17   :  { %s379_s0 = smov 128   ;;  %s380_s23 = smov 8  }
  0x18   :  { %37 = dma.hbm_to_vmem [thread:$0]  %s446_s2, 384, %s32_s21, [#allocation4], %s379_s0, %s379_s0, %s380_s23  }
  0x19   :  { %s381_s26 = smov [#allocation8]  }
  0x1a   :  { %s43_s27 = sshll.u32 %s381_s26, 4  ;;  %s44_s27 = int_to_ptr.vmem [resolvable:$true] %s43_s27 }
  0x1b   :  { %s337_s28 = scalar_lea.vmem %s44_s27, 1152  ;;  %p342_p11 = scmp.lt.s32.totalorder %s44_s27, %s44_s27 }
  0x1c   :  { %p338_p10 = scmp.ne.s32.totalorder %s44_s27, %s337_s28  ;;  %p343_p12 = scmp.lt.s32.totalorder %s337_s28, %s337_s28 }
  0x1e   :  { %p344_p13 = por %p343_p12, %p342_p11 }
  0x20   :  { %p345_p0 = pnand %p344_p13, %p338_p10 }
  0x22   :  { %348 = shalt.err (!%p345_p0)
}
  0x23   :  { %49 = dma.hbm_to_vmem [thread:$0]  %s447_s3, 1152, %s44_s27, [#allocation9], %s379_s0, %s379_s0, %s380_s23  }
  0x24   :  { %369 = dma.done.wait [#allocation6], 16  }
  0x25   :  { %370 = vsyncadd [#allocation6], 4294967280 }
  0x26   :  { %371 = dma.done.wait [#allocation4], 384  }
  0x27   :  { %372 = vsyncadd [#allocation4], 4294966912 }
  0x28   :  { %373 = dma.done.wait [#allocation9], 1152  }
  0x29   :  { %374 = vsyncadd [#allocation9], 4294966144 }
  0x2a   :  { %59 = sfence }
  0x2b   :  { %v72_v0 = vld [vmem:[#allocation8 + $0x8] sm:$0xff]  ;;  %v124_v1 = vld [vmem:[#allocation8 + $0x18] sm:$0xff]  ;;  %v87_v2 = vld [vmem:[#allocation8 + $0x10] sm:$0xff]  ;;  %s417_s2 = sld [smem:[#allocation3 + $0x1]]  ;;  %s382_s8 = smov [#allocation10]   ;;  %vm222_vm0 = vcmask 0  }
  0x2c   :  { %73 = vmax.xlane.f32.xlu0 %v72_v0  ;;  %125 = vmax.xlane.f32.xlu1 %v124_v1  ;;  %v139_v3 = vld [vmem:[#allocation8 + $0x28] sm:$0xff]  ;;  %v175_v4 = vld [vmem:[#allocation8 + $0x30] sm:$0xff]  ;;  %v188_v5 = vld [vmem:[#allocation8 + $0x38] sm:$0xff]  ;;  %s419_s3 = sld [smem:[#allocation3 + $0x2]]  ;;  %s230_s9 = sshll.u32 %s382_s8, 4  ;;  %s231_s9 = int_to_ptr.vmem [resolvable:$true] %s230_s9 }
  0x2d   :  { %v60_v30 = vld [vmem:[#allocation7] sm:$0xff]  ;;  %v112_v31 = vld [vmem:[#allocation7 + $0x8] sm:$0xff]  ;;  %v163_v32 = vld [vmem:[#allocation7 + $0x10] sm:$0xff]  ;;  %s421_s5 = sld [smem:[#allocation3]]  ;;  %s349_s10 = scalar_lea.vmem %s231_s9, 16 }
  0x2e   :  { %p350_p1 = scmp.ne.s32.totalorder %s231_s9, %s349_s10  ;;  %s353_s11 = scalar_lea.vmem %s231_s9, 32 }
  0x2f   :  { %p354_p2 = scmp.lt.s32.totalorder %s231_s9, %s231_s9  ;;  %p355_p3 = scmp.lt.s32.totalorder %s353_s11, %s349_s10 }
  0x30   :  { %88 = vmax.xlane.f32.xlu0 %v87_v2  ;;  %140 = vmax.xlane.f32.xlu1 %v139_v3 }
  0x31   :  { %v83_v42 = vstv %s417_s2  ;;  %p356_p4 = por %p355_p3, %p354_p2 }
  0x32   :  { %v98_v46 = vstv %s419_s3 }
  0x33   :  { %v135_v51 = vstv %s421_s5  ;;  %p357_p5 = pnand %p356_p4, %p350_p1 }
  0x34   :  { %176 = vmax.xlane.f32.xlu0 %v175_v4  ;;  %189 = vmax.xlane.f32.xlu1 %v188_v5 }
  0xb5   :  { %v74_v6 = vpop.xlane.xlu0 %73  ;;  %v126_v7 = vpop.xlane.xlu1 %125 }
  0xb6   :  { %v75_v8 = vsub.f32 %v72_v0, %v74_v6  ;;  %v127_v9 = vsub.f32 %v124_v1, %v126_v7 }
  0xb8   :  { %v76_v10 = vmul.f32 1.442695, %v75_v8  ;;  %v128_v11 = vmul.f32 1.442695, %v127_v9 }
  0xb9   :  { %v89_v12 = vpop.xlane.xlu0 %88  ;;  %v141_v13 = vpop.xlane.xlu1 %140 }
  0xba   :  { %249 = vpow2.f32 %v76_v10  ;;  %v90_v14 = vsub.f32 %v87_v2, %v89_v12  ;;  %v142_v15 = vsub.f32 %v139_v3, %v141_v13 }
  0xbb   :  { %251 = vpow2.f32 %v128_v11 }
  0xbc   :  { %v91_v16 = vmul.f32 1.442695, %v90_v14  ;;  %v143_v17 = vmul.f32 1.442695, %v142_v15 }
  0xbd   :  { %v177_v18 = vpop.xlane.xlu0 %176  ;;  %v190_v19 = vpop.xlane.xlu1 %189 }
  0xbe   :  { %253 = vpow2.f32 %v91_v16  ;;  %v178_v20 = vsub.f32 %v175_v4, %v177_v18  ;;  %v191_v21 = vsub.f32 %v188_v5, %v190_v19 }
  0xbf   :  { %255 = vpow2.f32 %v143_v17 }
  0xc0   :  { %v179_v22 = vmul.f32 1.442695, %v178_v20  ;;  %v192_v23 = vmul.f32 1.442695, %v191_v21 }
  0xc2   :  { %257 = vpow2.f32 %v179_v22 }
  0xc3   :  { %259 = vpow2.f32 %v192_v23 }
  0xc7   :  { %v250_v24 = vpop.eup %249 }
  0xc8   :  { %78 = vadd.xlane.f32.xlu0 %v250_v24  ;;  %v252_v25 = vpop.eup %251 }
  0xcb   :  { %v254_v26 = vpop.eup %253 }
  0xcc   :  { %130 = vadd.xlane.f32.xlu0 %v252_v25  ;;  %93 = vadd.xlane.f32.xlu1 %v254_v26  ;;  %v256_v27 = vpop.eup %255 }
  0xcf   :  { %v258_v28 = vpop.eup %257 }
  0xd0   :  { %145 = vadd.xlane.f32.xlu1 %v256_v27  ;;  %181 = vadd.xlane.f32.xlu0 %v258_v28  ;;  %v260_v29 = vpop.eup %259 }
  0xd4   :  { %194 = vadd.xlane.f32.xlu1 %v260_v29  ;;  %61 = vmax.xlane.f32.xlu0 %v60_v30 }
  0xd8   :  { %113 = vmax.xlane.f32.xlu1 %v112_v31  ;;  %164 = vmax.xlane.f32.xlu0 %v163_v32 }
 0x151   :  { %v79_v33 = vpop.xlane.xlu0 %78 }
 0x152   :  { %261 = vrcp.f32 %v79_v33 }
 0x155   :  { %v94_v34 = vpop.xlane.xlu1 %93  ;;  %v131_v35 = vpop.xlane.xlu0 %130 }
 0x156   :  { %263 = vrcp.f32 %v94_v34 }
 0x157   :  { %265 = vrcp.f32 %v131_v35 }
 0x159   :  { %v146_v36 = vpop.xlane.xlu1 %145  ;;  %v182_v37 = vpop.xlane.xlu0 %181 }
 0x15a   :  { %267 = vrcp.f32 %v146_v36 }
 0x15b   :  { %269 = vrcp.f32 %v182_v37 }
 0x15d   :  { %v195_v38 = vpop.xlane.xlu1 %194  ;;  %v62_v39 = vpop.xlane.xlu0 %61 }
 0x15e   :  { %271 = vrcp.f32 %v195_v38  ;;  %v423_v40 = vsub.f32 %v60_v30, %v62_v39 }
 0x15f   :  { %v262_v41 = vpop.eup %261 }
 0x160   :  { %v64_v43 = vmul.f32 1.442695, %v423_v40  ;;  %v84_v49 = vmul.f32 %v262_v41, %v83_v42 }
 0x161   :  { %v114_v44 = vpop.xlane.xlu1 %113  ;;  %v165_v45 = vpop.xlane.xlu0 %164 }
 0x162   :  { %273 = vpow2.f32 %v64_v43  ;;  %v428_v47 = vsub.f32 %v112_v31, %v114_v44  ;;  %v430_v48 = vsub.f32 %v163_v32, %v165_v45  ;;  %v85_v56 = vmul.f32 %v250_v24, %v84_v49 }
 0x163   :  { %v264_v50 = vpop.eup %263 }
 0x164   :  { %v266_v52 = vpop.eup %265  ;;  %v116_v53 = vmul.f32 1.442695, %v428_v47  ;;  %v167_v54 = vmul.f32 1.442695, %v430_v48  ;;  %v99_v55 = vmul.f32 %v264_v50, %v98_v46 }
 0x165   :  { %v136_v58 = vmul.f32 %v266_v52, %v135_v51 }
 0x166   :  { %275 = vpow2.f32 %v116_v53  ;;  %v100_v57 = vmul.f32 %v254_v26, %v99_v55  ;;  %v220_v53 = vstv %s445_s1 }
 0x167   :  { %v268_v59 = vpop.eup %267  ;;  %277 = vpow2.f32 %v167_v54  ;;  %v137_v63 = vmul.f32 %v252_v25, %v136_v58 }
 0x168   :  { %v270_v60 = vpop.eup %269  ;;  %v101_v61 = vadd.f32 %v100_v57, %v85_v56  ;;  %v149_v62 = vmul.f32 %v268_v59, %v98_v46 }
 0x169   :  { %v185_v1 = vmul.f32 %v270_v60, %v135_v51 }
 0x16a   :  { %102 = vadd.xlane.f32.xlu1 %v101_v61  ;;  %v150_v0 = vmul.f32 %v256_v27, %v149_v62 }
 0x16b   :  { %v272_v2 = vpop.eup %271  ;;  %v186_v5 = vmul.f32 %v258_v28, %v185_v1 }
 0x16c   :  { %v151_v3 = vadd.f32 %v150_v0, %v137_v63  ;;  %v198_v4 = vmul.f32 %v272_v2, %v83_v42 }
 0x16e   :  { %152 = vadd.xlane.f32.xlu0 %v151_v3  ;;  %v199_v6 = vmul.f32 %v260_v29, %v198_v4 }
 0x16f   :  { %v274_v7 = vpop.eup %273 }
 0x170   :  { %v200_v8 = vadd.f32 %v199_v6, %v186_v5 }
 0x172   :  { %201 = vadd.xlane.f32.xlu1 %v200_v8  ;;  %66 = vadd.xlane.f32.xlu0 %v274_v7 }
 0x173   :  { %v276_v9 = vpop.eup %275 }
 0x174   :  { %v278_v10 = vpop.eup %277 }
 0x176   :  { %118 = vadd.xlane.f32.xlu1 %v276_v9  ;;  %169 = vadd.xlane.f32.xlu0 %v278_v10 }
 0x1f3   :  { %v103_v11 = vpop.xlane.xlu1 %102 }
 0x1f4   :  { %279 = vrcp.f32 %v103_v11 }
 0x1f7   :  { %v153_v12 = vpop.xlane.xlu0 %152 }
 0x1f8   :  { %281 = vrcp.f32 %v153_v12 }
 0x1fb   :  { %v202_v13 = vpop.xlane.xlu1 %201  ;;  %v67_v14 = vpop.xlane.xlu0 %66 }
 0x1fc   :  { %283 = vrcp.f32 %v202_v13 }
 0x1fd   :  { %285 = vlog2.f32 %v67_v14 }
 0x1ff   :  { %v119_v15 = vpop.xlane.xlu1 %118  ;;  %v170_v18 = vpop.xlane.xlu0 %169 }
 0x200   :  { %287 = vlog2.f32 %v119_v15 }
 0x201   :  { %v280_v16 = vpop.eup %279 }
 0x202   :  { %v106_v17 = vmul.f32 %v280_v16, %v101_v61 }
 0x204   :  { %289 = vlog2.f32 %v106_v17 }
 0x205   :  { %v282_v19 = vpop.eup %281  ;;  %291 = vlog2.f32 %v170_v18 }
 0x206   :  { %v156_v20 = vmul.f32 %v282_v19, %v151_v3 }
 0x208   :  { %293 = vlog2.f32 %v156_v20 }
 0x209   :  { %v284_v21 = vpop.eup %283 }
 0x20a   :  { %v205_v22 = vmul.f32 %v284_v21, %v200_v8  ;;  %v286_v23 = vpop.eup %285 }
 0x20b   :  { %v69_v26 = vmul.f32 0.6931472, %v286_v23 }
 0x20c   :  { %295 = vlog2.f32 %v205_v22 }
 0x20d   :  { %v288_v24 = vpop.eup %287  ;;  %v70_v31 = vsub.f32 %v423_v40, %v69_v26 }
 0x20e   :  { %v121_v27 = vmul.f32 0.6931472, %v288_v24 }
 0x210   :  { %v122_v32 = vsub.f32 %v428_v47, %v121_v27 }
 0x211   :  { %v290_v25 = vpop.eup %289 }
 0x212   :  { %v292_v28 = vpop.eup %291  ;;  %v108_v29 = vmul.f32 0.6931472, %v290_v25 }
 0x213   :  { %v172_v33 = vmul.f32 0.6931472, %v292_v28 }
 0x214   :  { %v109_v35 = vsub.f32 %v108_v29, %v70_v31 }
 0x215   :  { %v294_v30 = vpop.eup %293  ;;  %v173_v38 = vsub.f32 %v430_v48, %v172_v33 }
 0x216   :  { %v158_v34 = vmul.f32 0.6931472, %v294_v30  ;;  %v110_v42 = vmul.f32 %v109_v35, %v106_v17 }
 0x218   :  { %v159_v36 = vsub.f32 %v158_v34, %v122_v32 }
 0x219   :  { %v296_v37 = vpop.eup %295 }
 0x21a   :  { %v160_v39 = vmul.f32 %v159_v36, %v156_v20  ;;  %v207_v41 = vmul.f32 0.6931472, %v296_v37 }
 0x21c   :  { %v208_v43 = vsub.f32 %v207_v41, %v173_v38  ;;  %v161_v44 = vadd.f32 %v160_v39, %v110_v42 }
 0x21e   :  { %v209_v45 = vmul.f32 %v208_v43, %v205_v22 }
 0x220   :  { %v210_v46 = vadd.f32 %v209_v45, %v161_v44 }
 0x222   :  { %211 = vadd.xlane.f32.xlu1 %v210_v46 }
 0x2ab   :  { %v212_v49 = vpop.xlane.xlu1 %211 }
 0x2ac   :  { %v213_v50 = vrot.slane %v212_v49, 4 }
 0x2ae   :  { %v214_v40 = vadd.f32 %v213_v50, %v212_v49 }
 0x2b0   :  { %v215_v51 = vrot.slane %v214_v40, 2 }
 0x2b2   :  { %v216_v47 = vadd.f32 %v215_v51, %v214_v40 }
 0x2b4   :  { %v217_v52 = vrot.slane %v216_v47, 1 }
 0x2b6   :  { %v218_v48 = vadd.f32 %v217_v52, %v216_v47 }
 0x2b8   :  { %v221_v54 = vmul.f32 %v220_v53, %v218_v48 }
 0x2ba   :  { %223 = vst.msk [vmem:[#allocation10] sm:$0x1] %vm222_vm0, %v221_v54 }
 0x2bb   :  { %360 = shalt.err (!%p357_p5)
}
 0x2bc   :  { %233 = dma.vmem_to_hbm [thread:$0]  %s231_s9, 16, %s448_s4, [#allocation5]  }
 0x2bd   :  { %375 = dma.done.wait [#allocation5], 16  }
 0x2be   :  { %376 = vsyncadd [#allocation5], 4294967280 }
 0x2bf   :  { %237 = vsyncpa [#allocation4], 1 }
 0x2c0   :  { %238 = vsyncpa [#allocation9], 1 }
 0x2c1   :  { %239 = vsyncpa [#allocation5], 1 }
 0x2c2   :  { %240 = vsyncpa [#allocation6], 1 }

</bundles_post_ra>
